<compile_context>
chip_gen: v5e
topology: v5e:2x2
jax: 0.10.0
libtpu: 0.0.40
codegen_flags: <defaults>
</compile_context>

<pallas_src>
import functools
import math

import jax
import jax.numpy as jnp
from jax.experimental import pallas as pl
from jax.experimental.pallas import tpu as pltpu


# --------------------------------------------------------------------------
# Kernel
# --------------------------------------------------------------------------
def _uniform_bits(shape, seq_offset, seq_tile, seed_u32):
    """Per-element uint32 hash of (seed, global element index).

    Pure jnp integer ops only (VPU on TPU; works in interpret mode too).
    Uses the 'lowbias32' finalizer, which has good avalanche for counters.
    """
    _, B, D = shape
    i0 = jax.lax.broadcasted_iota(jnp.int32, shape, 0) + seq_offset * seq_tile
    i1 = jax.lax.broadcasted_iota(jnp.int32, shape, 1)
    i2 = jax.lax.broadcasted_iota(jnp.int32, shape, 2)
    idx = (i0 * (B * D) + i1 * D + i2).astype(jnp.uint32)

    x = idx * jnp.uint32(0x9E3779B9) + seed_u32
    x = x ^ (x >> 16)
    x = x * jnp.uint32(0x7FEB352D)
    x = x ^ (x >> 15)
    x = x * jnp.uint32(0x846CA68B)
    x = x ^ (x >> 16)
    return x


def pe_add_kernel(seed_ref, x_ref, pe_ref, o_ref, *, dropout_p, apply_dropout,
                  seq_tile):
    # x_ref: (TS, B, D), pe_ref: (TS, 1, D) -> broadcast add over the batch
    # (sublane) axis.  Single fused elementwise pass, lane-dense on D.
    y = x_ref[...] + pe_ref[...]

    if apply_dropout:
        # Inverted dropout.  Randomness = hash(seed, global element index), so
        # it is deterministic and independent of tiling order.
        seed_u32 = (seed_ref[0].astype(jnp.uint32) * jnp.uint32(0x85EBCA6B)
                    ^ jnp.uint32(0x27D4EB2F))
        bits = _uniform_bits(y.shape, pl.program_id(0), seq_tile, seed_u32)
        # Drop iff bits < p * 2^32  (pure integer compare, no float convert).
        thresh = jnp.uint32(min(int(dropout_p * (2.0 ** 32)), 2 ** 32 - 1))
        keep = bits >= thresh
        y = jnp.where(keep, y * (1.0 / (1.0 - dropout_p)), 0.0)

    o_ref[...] = y.astype(o_ref.dtype)


# --------------------------------------------------------------------------
# Wrapper
# --------------------------------------------------------------------------
def _pick_seq_tile(S, B, D, itemsize, vmem_block_budget=4 * 1024 * 1024):
    """Largest sequence tile that (a) divides S, (b) keeps the per-step block
    footprint (x + out + pe rows) under the budget, (c) leaves >= 2 grid steps
    when possible so the 'parallel' axis can shard across two TensorCores."""
    row_bytes = (2 * B + 1) * D * itemsize
    ts = max(1, min(S, vmem_block_budget // max(row_bytes, 1)))
    while S % ts:
        ts -= 1
    if S >= 2 and S // ts < 2:          # give megacore at least 2 steps
        ts = max(1, S // 2)
        while S % ts:
            ts -= 1
    return ts


def positional_encoding_forward(x, pe, *, dropout_p=0.0, deterministic=True,
                                seed=0):
    """x: (seq_len, batch, d_model); pe: (max_len, 1, d_model).

    Returns Dropout(x + pe[:seq_len]).  With deterministic=True (eval mode) or
    dropout_p == 0 the dropout is the identity, matching nn.Dropout in eval.
    """
    S, B, D = x.shape
    pe_s = pe[:S].astype(x.dtype)                       # (S, 1, D), free slice

    ts = _pick_seq_tile(S, B, D, jnp.dtype(x.dtype).itemsize)
    grid = (S // ts,)

    apply_dropout = (not deterministic) and float(dropout_p) > 0.0
    kernel = functools.partial(pe_add_kernel,
                               dropout_p=float(dropout_p),
                               apply_dropout=apply_dropout,
                               seq_tile=ts)
    seed_arr = jnp.asarray([seed], dtype=jnp.int32)

    return pl.pallas_call(
        kernel,
        out_shape=jax.ShapeDtypeStruct((S, B, D), x.dtype),
        grid_spec=pltpu.PrefetchScalarGridSpec(
            num_scalar_prefetch=1,
            grid=grid,
            in_specs=[
                pl.BlockSpec((ts, B, D), lambda i, seed_ref: (i, 0, 0)),
                pl.BlockSpec((ts, 1, D), lambda i, seed_ref: (i, 0, 0)),
            ],
            out_specs=pl.BlockSpec((ts, B, D), lambda i, seed_ref: (i, 0, 0)),
        ),
        compiler_params=pltpu.CompilerParams(
            dimension_semantics=("parallel",)),
    )(seed_arr, x, pe_s)


# --------------------------------------------------------------------------
# Parameter construction + pure-JAX reference (mirrors the PyTorch module)
# --------------------------------------------------------------------------
def build_pe(d_model, max_len):
    """Exactly the buffer PyTorch's PositionalEncoding builds: (max_len, 1, D)."""
    position = jnp.arange(max_len, dtype=jnp.float32)[:, None]
    div_term = jnp.exp(jnp.arange(0, d_model, 2, dtype=jnp.float32)
                       * (-math.log(10000.0) / d_model))
    pe = jnp.zeros((max_len, 1, d_model), jnp.float32)
    pe = pe.at[:, 0, 0::2].set(jnp.sin(position * div_term))
    pe = pe.at[:, 0, 1::2].set(jnp.cos(position * div_term))
    return pe


def reference_forward_eval(x, pe):
    """Eval-mode reference: dropout is the identity."""
    return x + pe[:x.shape[0]]


# --------------------------------------------------------------------------
# Test
# --------------------------------------------------------------------------
if __name__ == "__main__":
    key = jax.random.PRNGKey(0)
    (k_x,) = jax.random.split(key, 1)

    SEQ_LEN, BATCH, D_MODEL, MAX_LEN = 16, 4, 128, 64
    DROPOUT_P = 0.1

    x = jax.random.normal(k_x, (SEQ_LEN, BATCH, D_MODEL), jnp.float32)
    pe = build_pe(D_MODEL, MAX_LEN)

    # --- eval mode (dropout = identity): exact numeric check -------------
    out = positional_encoding_forward(x, pe, dropout_p=DROPOUT_P,
                                      deterministic=True)
    out = jax.block_until_ready(out)
    ref = reference_forward_eval(x, pe)
    assert out.shape == (SEQ_LEN, BATCH, D_MODEL), out.shape
    assert jnp.allclose(out, ref, atol=1e-5, rtol=1e-5), (
        float(jnp.max(jnp.abs(out - ref))))

    # --- train mode: dropout path compiles/runs and is self-consistent ---
    out_d = positional_encoding_forward(x, pe, dropout_p=DROPOUT_P,
                                        deterministic=False, seed=123)
    out_d = jax.block_until_ready(out_d)
    assert out_d.shape == (SEQ_LEN, BATCH, D_MODEL), out_d.shape
    scaled_ref = ref / (1.0 - DROPOUT_P)
    # Every kept element must equal (x + pe) / (1 - p); dropped elements are 0.
    err = jnp.where(out_d != 0.0, out_d - scaled_ref, 0.0)
    assert float(jnp.max(jnp.abs(err))) < 1e-4, float(jnp.max(jnp.abs(err)))
    frac_zero = float(jnp.mean((out_d == 0.0).astype(jnp.float32)))
    assert 0.01 < frac_zero < 0.4, frac_zero   # ~p of entries dropped

    print("KERNEL_OK")
</pallas_src>

<mosaic_0001>
module attributes {stable_mosaic.version = 11 : i64} {
  func.func @pe_add_kernel(%arg0: i32, %arg1: memref<1xi32, #tpu.memory_space<smem>>, %arg2: memref<8x4x128xf32, #tpu.memory_space<vmem>>, %arg3: memref<8x1x128xf32, #tpu.memory_space<vmem>>, %arg4: memref<8x4x128xf32, #tpu.memory_space<vmem>>) attributes {dimension_semantics = [#tpu.dimension_semantics<parallel>], iteration_bounds = array<i64: 2>, scalar_prefetch = 1 : i64, scratch_operands = 0 : i64, tpu.core_type = #tpu.core_type<tc>, window_params = [{transform_indices = @transform_0, window_bounds = array<i64: 8, 4, 128>}, {transform_indices = @transform_1, window_bounds = array<i64: 8, 1, 128>}, {transform_indices = @transform_2, window_bounds = array<i64: 8, 4, 128>}]} {
    %c0 = arith.constant 0 : index
    %c0_0 = arith.constant 0 : index
    %c0_1 = arith.constant 0 : index
    %0 = vector.load %arg2[%c0, %c0_0, %c0_1] : memref<8x4x128xf32, #tpu.memory_space<vmem>>, vector<8x4x128xf32>
    %c0_2 = arith.constant 0 : index
    %c0_3 = arith.constant 0 : index
    %c0_4 = arith.constant 0 : index
    %1 = vector.load %arg3[%c0_2, %c0_3, %c0_4] : memref<8x1x128xf32, #tpu.memory_space<vmem>>, vector<8x1x128xf32>
    %2 = vector.broadcast %1 : vector<8x1x128xf32> to vector<8x4x128xf32>
    %3 = arith.addf %0, %2 : vector<8x4x128xf32>
    %c0_5 = arith.constant 0 : index
    %c0_6 = arith.constant 0 : index
    %c0_7 = arith.constant 0 : index
    %4 = vector.load %arg4[%c0_5, %c0_6, %c0_7] : memref<8x4x128xf32, #tpu.memory_space<vmem>>, vector<8x4x128xf32>
    tpu.vector_store %arg4[%c0_5, %c0_6, %c0_7], %3 {strides = array<i32>} : memref<8x4x128xf32, #tpu.memory_space<vmem>>, vector<8x4x128xf32>,
    return
  }
  func.func @transform_0(%arg0: i32, %arg1: memref<1xi32, #tpu.memory_space<smem>>) -> (i32, i32, i32) {
    %c0_i32 = arith.constant 0 : i32
    %c0_i32_0 = arith.constant 0 : i32
    %c0_i32_1 = arith.constant 0 : i32
    return %arg0, %c0_i32, %c0_i32_0 : i32, i32, i32
  }
  func.func @transform_1(%arg0: i32, %arg1: memref<1xi32, #tpu.memory_space<smem>>) -> (i32, i32, i32) {
    %c0_i32 = arith.constant 0 : i32
    %c0_i32_0 = arith.constant 0 : i32
    %c0_i32_1 = arith.constant 0 : i32
    return %arg0, %c0_i32, %c0_i32_0 : i32, i32, i32
  }
  func.func @transform_2(%arg0: i32, %arg1: memref<1xi32, #tpu.memory_space<smem>>) -> (i32, i32, i32) {
    %c0_i32 = arith.constant 0 : i32
    %c0_i32_0 = arith.constant 0 : i32
    %c0_i32_1 = arith.constant 0 : i32
    return %arg0, %c0_i32, %c0_i32_0 : i32, i32, i32
  }
}

</mosaic_0001>

<bundles_post_ra>
// kernel: tpu_custom_call.1
= control target key start
LH: loop header
LB: loop body
LE: loop exit
PB: predicated region body
PF: predicated region fallthrough
CT: control target
= control target key end

     0   :  { %9 = vsyncpa [#allocation5], 0  ;;  %s819_s0 = inlined_call_operand.<no memory space> [shape: s32[1], index: 0, kind: input, shape index: {}]   ;;  %s820_s1 = inlined_call_operand.hbm [shape: f32[16,4,128], index: 1, kind: input, shape index: {}]   ;;  %s821_s2 = inlined_call_operand.hbm [shape: f32[16,1,128], index: 2, kind: input, shape index: {}]   ;;  %s822_s3 = inlined_call_operand.hbm [shape: f32[16,4,128], index: 3, kind: output, shape index: {}]  }
   0x1   :  { %11 = vsyncpa [#allocation5 + $0x1], 0 }
   0x2   :  { %12 = vsyncpa [#allocation8], 0 }
   0x3   :  { %14 = vsyncpa [#allocation8 + $0x1], 0 }
   0x4   :  { %15 = vsyncpa [#allocation6], 0 }
   0x5   :  { %17 = vsyncpa [#allocation6 + $0x1], 0  ;;  %s620_s12 = smov 0   ;;  %s622_s13 = smov 0  }
   0x6   :  { %s624_s0 = smov 0   ;;  %s626_s14 = smov 0  }
   0x7 LB: > { %s641_s15 = sadd.s32 4294967295, %s592_s14   ;;  %s378_s16 = sadd.s32 4294967294, %s592_s14   ;;  %s592_s14 = sphi %s626_s14, %s833_s14   ;;  %s588_s0 = sphi %s624_s0, %s832_s0   ;;  %s584_s13 = sphi %s622_s13, %s831_s13   ;;  %s580_s12 = sphi %s620_s12, %s830_s12  }
   0x8   : > { %s645_s17 = sadd.s32 1, %s592_s14   ;;  %s30_s18 = sadd.s32 1, %s588_s0 }
   0x9   : > { %s27_s19 = ssub.s32 %s592_s14, %s645_s17  ;;  %p37_p0 = scmp.ne.s32.totalorder %s588_s0, %s584_s13 }
   0xa   : > { %p28_p1 = scmp.eq.s32.totalorder %s27_s19, 0  ;;  %p38_p2 = scmp.eq.s32.totalorder %s592_s14, 0 }
   0xb   : > { %p43_p3 = scmp.ne.s32.totalorder %s584_s13, %s580_s12  ;;  %p44_p4 = scmp.eq.s32.totalorder %s641_s15, 0 }
   0xc   : > { %s657_s20 = scalar_select %p28_p1, %s588_s0, %s30_s18  }
   0xd   : > { %p659_p5 = por %p38_p2, %p37_p0  ;;  %p663_p6 = por %p44_p4, %p43_p3 }
   0xe   : > { %p93_p7 = scmp.eq.s32.totalorder %s641_s15, 1  ;;  %p99_p8 = scmp.eq.s32.totalorder %s378_s16, 1 }
   0xf   : > { %p414_p10 = scmp.lt.s32.totalorder %s592_s14, 2  ;;  %s679_s25 = sand.u32 1, %s588_s0  }
  0x10   : > { %p670_p11 = por %p93_p7, %p37_p0  ;;  %p674_p12 = por %p99_p8, %p43_p3 }
  0x11   : > { %s395_s26 = sshll.u32 %s592_s14, 5  ;;  %s381_s27 = sshll.u32 %s679_s25, 5 }
  0x12   : > { %s128_s30 = scalar_lea.hbm %s820_s1, %s395_s26  ;;  %s123_s5 = scalar_lea.vmem [#allocation4], %s381_s27 }
  0x13   : > { %s129_s4 = sshll.u32 %s128_s30, 4  ;;  %s131_s6 = sshll.u32 %s123_s5, 4  ;;  %s130_s4 = int_to_ptr.hbm [resolvable:$true] %s129_s4  ;;  %s132_s6 = int_to_ptr.vmem [resolvable:$true] %s131_s6 }
  0x14   : > { %p688_p13 = pnand %p414_p10, %p659_p5  ;;  %p386_p0 = scmp.ge.s32.totalorder %s592_s14, 1 }
  0x15   : > { %p160_p1 = scmp.lt.s32.totalorder %s592_s14, 3  ;;  %s120_s8 = scalar_lea.sflag [#allocation5], %s679_s25 }
  0x16   : > { %s462_s9 = sshra.s32 %s130_s4, 4  ;;  %p466_p3 = pneg %p688_p13  ;;  %s463_s9 = int_to_ptr.hbm [resolvable:$true] %s462_s9 }
  0x17   : > { %s464_s10 = scalar_lea.hbm %s463_s9, 32  ;;  %s469_s18 = scalar_lea.hbm %s820_s1, 64 }
  0x18   : > { %p465_p2 = scmp.ne.s32.totalorder %s463_s9, %s464_s10  ;;  %p470_p5 = scmp.lt.s32.totalorder %s463_s9, %s820_s1 }
  0x19   : > { %p471_p8 = scmp.lt.s32.totalorder %s469_s18, %s464_s10 }
  0x1a   : > { %p467_p4 = pnand %p466_p3, %p465_p2 }
  0x1b   : > { %p472_p10 = por %p471_p8, %p470_p5 }
  0x1c   : > { %p468_p7 = pneg %p467_p4 }
  0x1e   : > { %p473_p9 = pnand %p472_p10, %p468_p7 }
  0x20   : > { %476 = shalt.err (!%p473_p9)
}
  0x21   : > { %s594_s26 = smov 64   ;;  %s595_s27 = smov 4  }
  0x22   : > { %406 = dma.hbm_to_vmem [thread:$0]  (!%p688_p13), %s130_s4, 512, %s132_s6, %s120_s8, %s594_s26, %s594_s26, %s595_s27  }
  0x23   : > { %p712_p2 = pnand %p386_p0, %p160_p1  ;;  %s384_s29 = sshll.u32 %s679_s25, 3 }
  0x24   : > { %s385_s30 = sshll.u32 %s592_s14, 3  ;;  %s145_s16 = scalar_lea.vmem [#allocation7], %s384_s29 }
  0x25   : > { %s149_s10 = scalar_lea.hbm %s821_s2, %s385_s30  ;;  %s152_s18 = sshll.u32 %s145_s16, 4  ;;  %s153_s18 = int_to_ptr.vmem [resolvable:$true] %s152_s18 }
  0x26   : > { %s150_s11 = sshll.u32 %s149_s10, 4  ;;  %s142_s19 = scalar_lea.sflag [#allocation8], %s679_s25  ;;  %s151_s11 = int_to_ptr.hbm [resolvable:$true] %s150_s11 }
  0x27   : > { %s492_s21 = sshra.s32 %s151_s11, 4  ;;  %s499_s26 = scalar_lea.hbm %s821_s2, 16  ;;  %s493_s21 = int_to_ptr.hbm [resolvable:$true] %s492_s21 }
  0x28   : > { %s494_s4 = scalar_lea.hbm %s493_s21, 8  ;;  %p500_p4 = scmp.lt.s32.totalorder %s493_s21, %s821_s2 }
  0x29   : > { %p495_p9 = scmp.ne.s32.totalorder %s493_s21, %s494_s4  ;;  %p501_p7 = scmp.lt.s32.totalorder %s499_s26, %s494_s4 }
  0x2b   : > { %p497_p0 = pnand %p495_p9, %p466_p3  ;;  %p502_p5 = por %p501_p7, %p500_p4 }
  0x2d   : > { %p498_p1 = pneg %p497_p0 }
  0x2f   : > { %p503_p8 = pnand %p502_p5, %p498_p1 }
  0x31   : > { %506 = shalt.err (!%p503_p8)
}
  0x32   : > { %s596_s25 = smov 16   ;;  %s597_s29 = smov 1  }
  0x33   : > { %409 = dma.hbm_to_vmem [thread:$0]  (!%p688_p13), %s151_s11, 128, %s153_s18, %s142_s19, %s596_s25, %s596_s25, %s597_s29  }
  0x34   : > { %164 = sbr.rel (%p712_p2) target bundleno = 81 (0x51), region = 28  ;;  %s736_s5 = sand.u32 (!%p712_p2), 1, %s584_s13  }
  0x35   : > { %s387_s9 = sshll.u32 (!%p712_p2), %s736_s5, 5  ;;  %s167_s10 = scalar_lea.sflag (!%p712_p2), [#allocation5], %s736_s5 }
  0x36   : > { %s740_s16 = scalar_lea.vmem (!%p712_p2), [#allocation4], %s387_s9 }
  0x39   : > { %567 = dma.done.wait (%p663_p6), %s167_s10, 512  }
  0x3a   : > { %569 = vsyncadd (%p663_p6), %s167_s10, 4294966784  ;;  %s388_s7 = sshll.u32 %s736_s5, 3  ;;  %s177_s28 = scalar_lea.sflag [#allocation8], %s736_s5 }
  0x3b   : > { %s748_s11 = scalar_lea.vmem [#allocation7], %s388_s7 }
  0x3c   : > { %571 = dma.done.wait (%p663_p6), %s177_s28, 128  }
  0x3d   : > { %573 = vsyncadd (%p663_p6), %s177_s28, 4294967168  ;;  %s396_s18 = sshll.u32 %s641_s15, 5  ;;  %s755_s19 = scalar_lea.vmem [#allocation9], %s387_s9  ;;  %v210_v0 = vld [vmem:[%s740_s16] sm:$0xf] }
  0x3e   : > { %s279_s21 = sshll.u32 %s755_s19, 4  ;;  %v454_v1 = vld [vmem:[%s748_s11] ss:$0 sm:$0xff]  ;;  %v211_v2 = vld [vmem:[%s740_s16 + $0x4] sm:$0xf]  ;;  %s765_s6 = scalar_lea.hbm %s822_s3, %s396_s18  ;;  %s280_s21 = int_to_ptr.vmem [resolvable:$true] %s279_s21 }
  0x3f   : > { %v455_v3 = vld [vmem:[%s748_s11 + $0x1] ss:$0 sm:$0xff]  ;;  %v250_v4 = vadd.f32 %v454_v1, %v210_v0  ;;  %v456_v6 = vld [vmem:[%s748_s11 + $0x2] ss:$0 sm:$0xff]  ;;  %v213_v8 = vld [vmem:[%s740_s16 + $0xc] sm:$0xf] }
  0x40   : > { %v212_v5 = vld [vmem:[%s740_s16 + $0x8] sm:$0xf]  ;;  %v251_v7 = vadd.f32 %v455_v3, %v211_v2  ;;  %v214_v11 = vld [vmem:[%s740_s16 + $0x10] sm:$0xf]  ;;  %s281_s15 = sshll.u32 %s765_s6, 4  ;;  %s267_s8 = scalar_lea.sflag [#allocation6], %s736_s5  ;;  %s282_s15 = int_to_ptr.hbm [resolvable:$true] %s281_s15 }
  0x41   : > { %v457_v9 = vld [vmem:[%s748_s11 + $0x3] ss:$0 sm:$0xff]  ;;  %258 = vst [vmem:[%s755_s19] sm:$0xf] %v250_v4  ;;  %v252_v10 = vadd.f32 %v456_v6, %v212_v5  ;;  %v458_v13 = vld [vmem:[%s748_s11 + $0x4] ss:$0 sm:$0xff]  ;;  %s536_s26 = sshra.s32 %s282_s15, 4  ;;  %s537_s26 = int_to_ptr.hbm [resolvable:$true] %s536_s26 }
  0x42   : > { %259 = vst [vmem:[%s755_s19 + $0x4] sm:$0xf] %v251_v7  ;;  %v253_v12 = vadd.f32 %v457_v9, %v213_v8  ;;  %v215_v14 = vld [vmem:[%s740_s16 + $0x14] sm:$0xf]  ;;  %v459_v15 = vld [vmem:[%s748_s11 + $0x5] ss:$0 sm:$0xff]  ;;  %v254_v16 = vadd.f32 %v458_v13, %v214_v11  ;;  %p543_p10 = scmp.lt.s32.totalorder %s537_s26, %s822_s3 }
  0x43   : > { %260 = vst [vmem:[%s755_s19 + $0x8] sm:$0xf] %v252_v10  ;;  %v216_v17 = vld [vmem:[%s740_s16 + $0x18] sm:$0xf]  ;;  %v255_v18 = vadd.f32 %v459_v15, %v215_v14  ;;  %v460_v19 = vld [vmem:[%s748_s11 + $0x6] ss:$0 sm:$0xff] }
  0x44   : > { %261 = vst [vmem:[%s755_s19 + $0xc] sm:$0xf] %v253_v12  ;;  %v217_v20 = vld [vmem:[%s740_s16 + $0x1c] sm:$0xf]  ;;  %v461_v21 = vld [vmem:[%s748_s11 + $0x7] ss:$0 sm:$0xff]  ;;  %v256_v22 = vadd.f32 %v460_v19, %v216_v17 }
  0x45   : > { %262 = vst [vmem:[%s755_s19 + $0x10] sm:$0xf] %v254_v16  ;;  %v257_v23 = vadd.f32 %v461_v21, %v217_v20  ;;  %s538_s27 = scalar_lea.hbm %s537_s26, 32  ;;  %s542_s29 = scalar_lea.hbm %s822_s3, 64 }
  0x46   : > { %263 = vst [vmem:[%s755_s19 + $0x14] sm:$0xf] %v255_v18  ;;  %p539_p6 = scmp.ne.s32.totalorder %s537_s26, %s538_s27  ;;  %p544_p2 = scmp.lt.s32.totalorder %s542_s29, %s538_s27 }
  0x47   : > { %264 = vst [vmem:[%s755_s19 + $0x18] sm:$0xf] %v256_v22 }
  0x48   : > { %265 = vst [vmem:[%s755_s19 + $0x1c] sm:$0xf] %v257_v23  ;;  %p540_p13 = pnand %p539_p6, %p670_p11  ;;  %p545_p9 = por %p544_p2, %p543_p10 }
  0x4a   : > { %p541_p3 = pneg %p540_p13 }
  0x4c   : > { %p546_p0 = pnand %p545_p9, %p541_p3 }
  0x4e   : > { %549 = shalt.err (!%p546_p0)
}
  0x4f   : > { %s598_s5 = smov 64   ;;  %s599_s16 = smov 4  }
  0x50   : > { %401 = dma.vmem_to_hbm [thread:$0]  (%p670_p11), %s280_s21, 512, %s282_s15, %s267_s8, %s598_s5, %s598_s5, %s599_s16  }
  0x51 PF: > { %s296_s7 = sand.u32 1, %s580_s12   ;;  %p829_p1 = scmp.ge.s32.totalorder %s592_s14, 2 }
  0x52   : > { %s297_s28 = scalar_lea.sflag [#allocation6], %s296_s7 }
  0x53   : > { %p411_p4 = pnand %p829_p1, %p674_p12 }
  0x55   : > { %p412_p7 = pneg %p411_p4 }
  0x57   : > { %575 = dma.done.wait (%p412_p7), %s297_s28, 512  }
  0x58   : > { %577 = vsyncadd (%p412_p7), %s297_s28, 4294966784  ;;  %p20_p5 = scmp.ge.s32.totalorder %s645_s17, 4   ;;  %s830_s12 = smov %s584_s13 }
  0x59   : > { %s831_s13 = smov %s588_s0  ;;  %s832_s0 = smov %s657_s20 }
  0x5a   : > { %s833_s14 = smov %s645_s17  ;;  %22 = sbr.rel (!%p20_p5) target bundleno = 7 (0x7), region = 86 }
  0x5f   :  { %303 = vsyncpa [#allocation5], 1 }
  0x60   :  { %305 = vsyncpa [#allocation5 + $0x1], 1 }
  0x61   :  { %306 = vsyncpa [#allocation8], 1 }
  0x62   :  { %308 = vsyncpa [#allocation8 + $0x1], 1 }
  0x63   :  { %309 = vsyncpa [#allocation6], 1 }
  0x64   :  { %311 = vsyncpa [#allocation6 + $0x1], 1 }

</bundles_post_ra>
